<compile_context>
chip_gen: v7x
topology: tpu7x:2x2x1
jax: 0.10.0
libtpu: 0.0.40
codegen_flags: <defaults>
</compile_context>

<pallas_src>
import math

import jax
import jax.numpy as jnp
from jax import lax
from jax.experimental import pallas as pl
from jax.experimental.pallas import tpu as pltpu


def _round_up(n, m):
    return ((n + m - 1) // m) * m


def _cdiv(a, b):
    return -(-a // b)


def _linear_sigmoid_kernel(x_ref, w_ref, b_ref, o_ref):
    # x_ref: [TB, D_in]     (f32 or bf16)
    # w_ref: [D_out, D_in]  (f32 or bf16)   -- PyTorch nn.Linear layout
    # b_ref: [1, D_out]     (f32)
    # o_ref: [TB, D_out]    (output dtype)
    #
    # Contract x with W on the shared D_in axis (x @ W^T) directly on the MXU
    # with f32 accumulation; no wrapper-side transpose needed.
    z = lax.dot_general(
        x_ref[...],
        w_ref[...],
        dimension_numbers=(((1,), (1,)), ((), ())),
        preferred_element_type=jnp.float32,
    )
    z = z + b_ref[...]  # broadcast (1, D_out) over rows, stays in f32

    # sigmoid(z) = 1 / (1 + exp(-z)); exp goes to the EUP. Exact reciprocal to
    # keep the 1e-5 tolerance vs. the f32 reference.
    sig = pl.reciprocal(1.0 + jnp.exp(-z), approx=False)
    o_ref[...] = sig.astype(o_ref.dtype)


def binary_classifier_forward(
    x,
    weight,
    bias,
    *,
    compute_dtype=None,
    vmem_budget_bytes=20 * 1024 * 1024,
    max_block_rows=8192,
):
    """Forward pass: sigmoid(x @ weight.T + bias).

    x:      [B, D_in]
    weight: [D_out, D_in]   (PyTorch nn.Linear layout, NOT pre-transposed)
    bias:   [D_out]
    compute_dtype:     optional MXU input dtype (e.g. jnp.bfloat16); the
                       accumulation, bias add and sigmoid always stay in f32.
    vmem_budget_bytes: soft cap used to decide single-block vs B-tiled path and
                       to size the row tile (conservative for v7x's 64 MiB VMEM).
    max_block_rows:    upper bound on rows per block / per tile.
    """
    B, D_in = x.shape
    D_out = weight.shape[0]
    out_dtype = x.dtype

    # TODO(synk): for production, hoist this cast/reshape out of the forward
    # and pass pre-prepared params; at these sizes it is negligible (D_out*4 B).
    if compute_dtype is not None:
        x = x.astype(compute_dtype)
        weight = weight.astype(compute_dtype)
    b2d = bias.reshape(1, D_out).astype(jnp.float32)

    in_bytes = jnp.dtype(x.dtype).itemsize
    out_bytes = jnp.dtype(out_dtype).itemsize
    row_bytes = D_in * in_bytes + D_out * out_bytes          # x row + out row
    w_bytes = D_out * D_in * in_bytes + D_out * 4            # weight + bias

    cost = pl.CostEstimate(
        flops=2 * B * D_in * D_out,
        transcendentals=B * D_out,
        bytes_accessed=B * D_in * in_bytes + w_bytes + B * D_out * out_bytes,
    )
    vmem_limit = pltpu.CompilerParams(vmem_limit_bytes=32 * 1024 * 1024)

    # ---- Single-block path: everything resident in VMEM, no grid/pipeline ----
    if B <= max_block_rows and B * row_bytes + w_bytes <= vmem_budget_bytes:
        return pl.pallas_call(
            _linear_sigmoid_kernel,
            out_shape=jax.ShapeDtypeStruct((B, D_out), out_dtype),
            in_specs=[
                pl.BlockSpec(memory_space=pltpu.MemorySpace.VMEM),
                pl.BlockSpec(memory_space=pltpu.MemorySpace.VMEM),
                pl.BlockSpec(memory_space=pltpu.MemorySpace.VMEM),
            ],
            out_specs=pl.BlockSpec(memory_space=pltpu.MemorySpace.VMEM),
            compiler_params=vmem_limit,
            cost_estimate=cost,
        )(x, weight, b2d)

    # ---- B-tiled grid path (large B) ----------------------------------------
    # Row tile from the VMEM budget: x/out tiles are double-buffered, W/bias are
    # kept resident (counted twice, conservatively).
    tile_budget = max(vmem_budget_bytes - 2 * w_bytes, 2 * 8 * row_bytes)
    tb = min(max_block_rows, tile_budget // (2 * row_bytes))
    tb = max(8, (tb // 8) * 8)

    n_tiles = _cdiv(B, tb)
    if n_tiles > 1 and n_tiles % 2 == 1:
        # Even tile count so v7x's two TensorCores get balanced "parallel" work.
        n_tiles += 1
        tb = max(8, _round_up(_cdiv(B, n_tiles), 8))
        n_tiles = _cdiv(B, tb)

    return pl.pallas_call(
        _linear_sigmoid_kernel,
        out_shape=jax.ShapeDtypeStruct((B, D_out), out_dtype),
        grid=(n_tiles,),
        in_specs=[
            # x: tiled over rows only; partial last tile handled by Pallas.
            pl.BlockSpec((tb, D_in), lambda i: (i, 0)),
            # W / bias: constant index_map -> DMA'd once, VMEM-resident.
            pl.BlockSpec((D_out, D_in), lambda i: (0, 0)),
            pl.BlockSpec((1, D_out), lambda i: (0, 0)),
        ],
        # Output block keeps the full (unpadded) last dim == D_out (legal since
        # it equals the array dim); masked stores cost far less than 16x padded
        # output traffic + a slice pass at D_out this small.
        out_specs=pl.BlockSpec((tb, D_out), lambda i: (i, 0)),
        compiler_params=pltpu.CompilerParams(
            dimension_semantics=("parallel",),
            vmem_limit_bytes=32 * 1024 * 1024,
        ),
        cost_estimate=cost,
    )(x, weight, b2d)


def init_params(key, d_in, d_out):
    """Deterministic params matching the PyTorch module's __init__:
    xavier_uniform_ for weight, default nn.Linear uniform init for bias."""
    kw, kb = jax.random.split(key)
    a = math.sqrt(6.0 / (d_in + d_out))  # xavier uniform, gain=1
    weight = jax.random.uniform(kw, (d_out, d_in), jnp.float32, -a, a)
    bound = 1.0 / math.sqrt(d_in)        # default nn.Linear bias init
    bias = jax.random.uniform(kb, (d_out,), jnp.float32, -bound, bound)
    return weight, bias


if __name__ == "__main__":
    key = jax.random.PRNGKey(0)
    kx, kp, kx2, kx3 = jax.random.split(key, 4)

    D_in, D_out = 32, 8
    weight, bias = init_params(kp, D_in, D_out)

    # 1) Small batch — single-block (no-grid) path, f32, tight tolerance.
    B = 8
    x = jax.random.normal(kx, (B, D_in), jnp.float32)
    out = jax.block_until_ready(binary_classifier_forward(x, weight, bias))
    ref = jax.nn.sigmoid(x @ weight.T + bias)
    assert out.shape == (B, D_out)
    assert jnp.allclose(out, ref, atol=1e-5, rtol=1e-5)

    # 2) Non-multiple-of-8 batch — still the single-block path (no padding, no
    #    slicing required anywhere).
    B2 = 1000
    x2 = jax.random.normal(kx2, (B2, D_in), jnp.float32)
    out2 = jax.block_until_ready(binary_classifier_forward(x2, weight, bias))
    ref2 = jax.nn.sigmoid(x2 @ weight.T + bias)
    assert out2.shape == (B2, D_out)
    assert jnp.allclose(out2, ref2, atol=1e-5, rtol=1e-5)

    # 3) Force the B-tiled "parallel" grid path (even tile count) by shrinking
    #    max_block_rows; exercises VMEM-resident W/bias across tiles.
    B3 = 1024
    x3 = jax.random.normal(kx3, (B3, D_in), jnp.float32)
    out3 = jax.block_until_ready(
        binary_classifier_forward(x3, weight, bias, max_block_rows=256)
    )
    ref3 = jax.nn.sigmoid(x3 @ weight.T + bias)
    assert out3.shape == (B3, D_out)
    assert jnp.allclose(out3, ref3, atol=1e-5, rtol=1e-5)

    # 4) bf16-input / f32-accumulate MXU path (v6e / v7x bandwidth optimization).
    out_bf16 = jax.block_until_ready(
        binary_classifier_forward(x3, weight, bias, compute_dtype=jnp.bfloat16)
    )
    assert out_bf16.shape == (B3, D_out)
    assert jnp.allclose(out_bf16, ref3, atol=2e-2, rtol=0)

    print("KERNEL_OK")
</pallas_src>

<mosaic_0001>
module attributes {stable_mosaic.version = 11 : i64} {
  func.func @_linear_sigmoid_kernel(%arg0: memref<8x32xf32, #tpu.memory_space<vmem>>, %arg1: memref<8x32xf32, #tpu.memory_space<vmem>>, %arg2: memref<1x8xf32, #tpu.memory_space<vmem>>, %arg3: memref<8x8xf32, #tpu.memory_space<vmem>>) attributes {dimension_semantics = [], scalar_prefetch = 0 : i64, scratch_operands = 0 : i64, tpu.core_type = #tpu.core_type<tc>} {
    %c0 = arith.constant 0 : index
    %c0_0 = arith.constant 0 : index
    %0 = vector.load %arg0[%c0, %c0_0] : memref<8x32xf32, #tpu.memory_space<vmem>>, vector<8x32xf32>
    %c0_1 = arith.constant 0 : index
    %c0_2 = arith.constant 0 : index
    %1 = vector.load %arg1[%c0_1, %c0_2] : memref<8x32xf32, #tpu.memory_space<vmem>>, vector<8x32xf32>
    %cst = arith.constant dense<0.000000e+00> : vector<8x8xf32>
    %2 = tpu.matmul %0, %1, %cst {dimension_numbers = #tpu.dot_dimension_numbers<[1], [1], [0], [0], [0, 0, 1, 0], [], []>} : vector<8x32xf32>, vector<8x32xf32>, vector<8x8xf32> -> vector<8x8xf32>
    %c0_3 = arith.constant 0 : index
    %c0_4 = arith.constant 0 : index
    %3 = vector.load %arg2[%c0_3, %c0_4] : memref<1x8xf32, #tpu.memory_space<vmem>>, vector<1x8xf32>
    %4 = vector.broadcast %3 : vector<1x8xf32> to vector<8x8xf32>
    %5 = arith.addf %2, %4 : vector<8x8xf32>
    %cst_5 = arith.constant 0.000000e+00 : f32
    %6 = vector.broadcast %cst_5 : f32 to vector<8x8xf32>
    %7 = arith.subf %6, %5 : vector<8x8xf32>
    %8 = math.exp %7 : vector<8x8xf32>
    %cst_6 = arith.constant 1.000000e+00 : f32
    %9 = vector.broadcast %cst_6 : f32 to vector<8x8xf32>
    %10 = arith.addf %9, %8 : vector<8x8xf32>
    %11 = tpu.reciprocal %10 : vector<8x8xf32> -> vector<8x8xf32>
    %c0_7 = arith.constant 0 : index
    %c0_8 = arith.constant 0 : index
    %12 = vector.load %arg3[%c0_7, %c0_8] : memref<8x8xf32, #tpu.memory_space<vmem>>, vector<8x8xf32>
    tpu.vector_store %arg3[%c0_7, %c0_8], %11 {strides = array<i32>} : memref<8x8xf32, #tpu.memory_space<vmem>>, vector<8x8xf32>,
    return
  }
}

</mosaic_0001>

<bundles_post_ra>
// kernel: tpu_custom_call.1
= control target key start
LH: loop header
LB: loop body
LE: loop exit
PB: predicated region body
PF: predicated region fallthrough
CT: control target
= control target key end

     0   :  { %8 = vsyncpa [#allocation3], 0  ;;  %s303_s0 = inlined_call_operand.hbm [shape: f32[8,32], index: 0, kind: input, shape index: {}]   ;;  %s304_s1 = inlined_call_operand.hbm [shape: f32[8,32], index: 1, kind: input, shape index: {}]   ;;  %s305_s2 = inlined_call_operand.vmem [shape: f32[1,8], index: 2, kind: input, shape index: {}]   ;;  %s306_s3 = inlined_call_operand.hbm [shape: f32[8,8], index: 3, kind: output, shape index: {}]  }
   0x1   :  { %9 = vsyncpa [#allocation6], 0 }
   0x2   :  { %10 = vsyncpa [#allocation4], 0  ;;  %s239_s12 = smov [#allocation2]   ;;  %s240_s14 = smov [#allocation5]  }
   0x3   :  { %s17_s13 = sshll.u32 %s239_s12, 4  ;;  %s27_s15 = sshll.u32 %s240_s14, 4  ;;  %s18_s13 = int_to_ptr.vmem [resolvable:$true] %s17_s13  ;;  %s28_s15 = int_to_ptr.vmem [resolvable:$true] %s27_s15 }
   0x4   :  { %s167_s18 = scalar_lea.hbm %s303_s0, 128 }
   0x5   :  { %p168_p0 = scmp.ne.s32.totalorder %s303_s0, %s167_s18  ;;  %p171_p1 = scmp.lt.u32.totalorder %s167_s18, %s303_s0 }
   0x7   :  { %p173_p2 = pnand %p171_p1, %p168_p0 }
   0x9   :  { %176 = shalt.err (!%p173_p2)
}
   0xa   :  { %s177_s23 = scalar_lea.vmem %s18_s13, 128  ;;  %p182_p4 = scmp.lt.s32.totalorder %s18_s13, %s18_s13 }
   0xb   :  { %p178_p3 = scmp.ne.s32.totalorder %s18_s13, %s177_s23  ;;  %p183_p5 = scmp.lt.s32.totalorder %s177_s23, %s177_s23 }
   0xd   :  { %p184_p6 = por %p183_p5, %p182_p4 }
   0xf   :  { %p185_p7 = pnand %p184_p6, %p178_p3 }
  0x11   :  { %188 = shalt.err (!%p185_p7)
}
  0x12   :  { %20 = dma.hbm_to_vmem [thread:$0]  %s303_s0, 128, %s18_s13, [#allocation3]  }
  0x13   :  { %s189_s28 = scalar_lea.hbm %s304_s1, 128 }
  0x14   :  { %p190_p8 = scmp.ne.s32.totalorder %s304_s1, %s189_s28  ;;  %p193_p9 = scmp.lt.u32.totalorder %s189_s28, %s304_s1 }
  0x16   :  { %p195_p10 = pnand %p193_p9, %p190_p8 }
  0x18   :  { %198 = shalt.err (!%p195_p10)
}
  0x19   :  { %s199_s6 = scalar_lea.vmem %s28_s15, 128  ;;  %p204_p12 = scmp.lt.s32.totalorder %s28_s15, %s28_s15 }
  0x1a   :  { %p200_p11 = scmp.ne.s32.totalorder %s28_s15, %s199_s6  ;;  %p205_p13 = scmp.lt.s32.totalorder %s199_s6, %s199_s6 }
  0x1c   :  { %p206_p0 = por %p205_p13, %p204_p12 }
  0x1e   :  { %p207_p1 = pnand %p206_p0, %p200_p11 }
  0x20   :  { %210 = shalt.err (!%p207_p1)
}
  0x21   :  { %30 = dma.hbm_to_vmem [thread:$0]  %s304_s1, 128, %s28_s15, [#allocation6]  }
  0x22   :  { %233 = dma.done.wait [#allocation3], 128  }
  0x23   :  { %234 = vsyncadd [#allocation3], 4294967168 }
  0x24   :  { %235 = dma.done.wait [#allocation6], 128  }
  0x25   :  { %236 = vsyncadd [#allocation6], 4294967168  ;;  %v241_v0 = vmov 0.0   ;;  %vm242_vm0 = vmmov 0   ;;  %vm48_vm1 = vcmask 261120   ;;  %v40_v1 = vld [vmem:[#allocation5] sm:$0xff] }
  0x26   :  { %153 = vmatprep.subr.mxu0 %v241_v0  ;;  %155 = vmatprep.mubr.msk.f32.mxu0 %vm242_vm0, %v241_v0  ;;  %v39_v2 = vld [vmem:[#allocation2] sm:$0xff]  ;;  %s243_s1 = smov [#allocation7]   ;;  %vm130_vm2 = vcmask 64512  }
  0x27   :  { %154 = vmatpush3.xpose.msk.msra.mxu0 %vm48_vm1, %v40_v1  ;;  %v148_v3 = vld [vmem:[%s305_s2] ss:$0 sm:$0xff]  ;;  %s138_s10 = sshll.u32 %s243_s1, 4  ;;  %s139_s10 = int_to_ptr.vmem [resolvable:$true] %s138_s10 }
  0x28   :  { %s211_s11 = scalar_lea.vmem %s139_s10, 128  ;;  %p216_p3 = scmp.lt.s32.totalorder %s139_s10, %s139_s10 }
  0x29   :  { %p212_p2 = scmp.ne.s32.totalorder %s139_s10, %s211_s11  ;;  %p217_p4 = scmp.lt.s32.totalorder %s211_s11, %s211_s11 }
  0x2a   :  { %156 = vmatmul.mubr.msk.f32.vlgmr.msra.gmra.mrb[0].mxu0 %vm48_vm1, %v39_v2 }
  0x2b   :  { %p218_p5 = por %p217_p4, %p216_p3 }
  0x2d   :  { %p219_p6 = pnand %p218_p5, %p212_p2 }
  0xfd   :  { %v121_v4 = vpop.f32.mrb[0].mxu0 }
  0xfe   :  { %v122_v5 = vadd.f32 %v148_v3, %v121_v4  ;;  %v157_v6 = vpop.f32.mrb[1].mxu0 }
 0x100   :  { %v125_v7 = vsub.f32 0.0, %v122_v5 }
 0x102   :  { %v126_v8 = vmul.f32 1.442695, %v125_v7 }
 0x104   :  { %163 = vpow2.f32 %v126_v8 }
 0x10e   :  { %v164_v9 = vpop.eup %163 }
 0x10f   :  { %v128_v10 = vadd.f32 1.0, %v164_v9 }
 0x111   :  { %165 = vrcp.f32 %v128_v10 }
 0x11b   :  { %v166_v11 = vpop.eup %165 }
 0x11c   :  { %131 = vst.msk [vmem:[#allocation7] sm:$0xff] %vm130_vm2, %v166_v11 }
 0x11d   :  { %222 = shalt.err (!%p219_p6)
}
 0x11e   :  { %s223_s13 = scalar_lea.hbm %s306_s3, 128 }
 0x11f   :  { %p224_p7 = scmp.ne.s32.totalorder %s306_s3, %s223_s13  ;;  %p227_p8 = scmp.lt.u32.totalorder %s223_s13, %s306_s3 }
 0x121   :  { %p229_p9 = pnand %p227_p8, %p224_p7 }
 0x123   :  { %232 = shalt.err (!%p229_p9)
}
 0x124   :  { %141 = dma.vmem_to_hbm [thread:$0]  %s139_s10, 128, %s306_s3, [#allocation4]  }
 0x125   :  { %237 = dma.done.wait [#allocation4], 128  }
 0x126   :  { %238 = vsyncadd [#allocation4], 4294967168 }
 0x127   :  { %145 = vsyncpa [#allocation3], 1 }
 0x128   :  { %146 = vsyncpa [#allocation6], 1 }
 0x129   :  { %147 = vsyncpa [#allocation4], 1 }

</bundles_post_ra>
